<compile_context>
chip_gen: v7x
topology: tpu7x:2x2x1
jax: 0.10.0
libtpu: 0.0.40
codegen_flags: <defaults>
</compile_context>

<pallas_src>
import functools
import math

import jax
import jax.numpy as jnp
from jax import lax
from jax.experimental import pallas as pl
from jax.experimental.pallas import tpu as pltpu


def _transformer_block_kernel(q_ref, k_ref, v_ref, mask_ref,
                              w1_ref, b1_ref, w2_ref, b2_ref,
                              o_ref, *, scale, mm_dtype):
    q = q_ref[...]                       # (Bt, Lr, Dp) f32
    k = k_ref[...]                       # (Bt, Lu, Dp) f32
    v = v_ref[...]                       # (Bt, Lu, Dp) f32
    mask = mask_ref[...]                 # (Bt, 1,  Lu) f32

    bt, lr, dp = q.shape

    # Scores: batched matmul contracting the last dims directly (no K transpose).
    s = lax.dot_general(
        q.astype(mm_dtype), k.astype(mm_dtype),
        dimension_numbers=(((2,), (2,)), ((0,), (0,))),
        preferred_element_type=jnp.float32) * scale          # (Bt, Lr, Lu) f32

    # masked_softmax exactly as the PyTorch reference (multiplicative masking),
    # kept in f32; divisions become EUP reciprocals (renorm cancels the first
    # reciprocal's approximation error).
    sm = s * mask
    m = jnp.max(sm, axis=-1, keepdims=True)
    e = jnp.exp(sm - m)
    p = e * pl.reciprocal(jnp.sum(e, axis=-1, keepdims=True), approx=True)
    p = p * mask
    p = p * pl.reciprocal(jnp.sum(p, axis=-1, keepdims=True) + jnp.float32(1e-13),
                          approx=True)

    # Attention output + residual.
    v_att = lax.dot_general(
        p.astype(mm_dtype), v.astype(mm_dtype),
        dimension_numbers=(((2,), (1,)), ((0,), (0,))),
        preferred_element_type=jnp.float32)                  # (Bt, Lr, Dp)
    x = q + v_att

    # FFN folded over the whole (Bt*Lr, Dp) slab; W1/W2 are batch-invariant so
    # this is one big MXU matmul per grid step (biases broadcast once).
    x2 = x.reshape(bt * lr, dp)
    h = jnp.maximum(
        jnp.dot(x2.astype(mm_dtype), w1_ref[...],
                preferred_element_type=jnp.float32) + b1_ref[...],
        0.0)
    out = jnp.dot(h.astype(mm_dtype), w2_ref[...],
                  preferred_element_type=jnp.float32) + b2_ref[...] + x2

    o_ref[...] = out.reshape(bt, lr, dp).astype(o_ref.dtype)


def transformer_block(Q, K, V, V_mask, W1, b1, W2, b2, epsilon=1e-8,
                      matmul_dtype=jnp.bfloat16):
    """Pallas TransformerBlock forward (is_layer_norm=False).

    Q: (B, Lr, D), K/V: (B, Lu, D), V_mask: (B, Lu)
    W1/W2: (D, D) already transposed to (in, out); b1/b2: (1, D)
    """
    # TODO(synk): is_layer_norm=True branch (nn.LayerNorm) not implemented; module default is False.
    B, Lr, D = Q.shape
    _, Lu, _ = K.shape

    # ---- lane-dense padding: last dim -> multiple of 128 (zeros are exact) ----
    Dp = ((D + 127) // 128) * 128
    pad = Dp - D
    if pad:
        Q_ = jnp.pad(Q, ((0, 0), (0, 0), (0, pad)))
        K_ = jnp.pad(K, ((0, 0), (0, 0), (0, pad)))
        V_ = jnp.pad(V, ((0, 0), (0, 0), (0, pad)))
        W1_ = jnp.pad(W1, ((0, pad), (0, pad)))
        W2_ = jnp.pad(W2, ((0, pad), (0, pad)))
        b1_ = jnp.pad(b1, ((0, 0), (0, pad)))
        b2_ = jnp.pad(b2, ((0, 0), (0, pad)))
    else:
        Q_, K_, V_, W1_, W2_, b1_, b2_ = Q, K, V, W1, W2, b1, b2

    Q_ = Q_.astype(jnp.float32)
    K_ = K_.astype(jnp.float32)
    V_ = V_.astype(jnp.float32)
    W1_ = W1_.astype(matmul_dtype)   # pre-cast weights once: halves HBM/VMEM traffic
    W2_ = W2_.astype(matmul_dtype)
    b1_ = b1_.astype(jnp.float32)    # biases added after f32 accumulation
    b2_ = b2_.astype(jnp.float32)
    mask3 = V_mask.reshape(B, 1, Lu).astype(jnp.float32)

    mm_bytes = jnp.dtype(matmul_dtype).itemsize

    def _block_bytes(bt):
        io = (bt * Lr * Dp + 2 * bt * Lu * Dp + bt * Lu + bt * Lr * Dp) * 4
        w = 2 * Dp * Dp * mm_bytes + 2 * Dp * 4
        return 2 * io + 2 * w            # double-buffered pipeline estimate

    # Batch tile: biggest divisor of B whose double-buffered block set fits a
    # conservative budget (safe for v7x's 64 MiB VMEM). For the tiny test shape
    # this is the whole batch -> a single grid step.
    budget = 32 * 1024 * 1024
    Bt = 1
    for cand in range(B, 0, -1):
        if B % cand == 0 and _block_bytes(cand) <= budget:
            Bt = cand
            break

    vmem_limit = int(min(max(2 * _block_bytes(Bt), 16 * 1024 * 1024),
                         64 * 1024 * 1024))

    scale = 1.0 / (math.sqrt(max(1.0, float(D))) + float(epsilon))
    kernel = functools.partial(_transformer_block_kernel,
                               scale=scale, mm_dtype=matmul_dtype)

    out_padded = pl.pallas_call(
        kernel,
        out_shape=jax.ShapeDtypeStruct((B, Lr, Dp), jnp.float32),
        grid_spec=pltpu.PrefetchScalarGridSpec(
            num_scalar_prefetch=0,
            grid=(B // Bt,),
            in_specs=[
                pl.BlockSpec((Bt, Lr, Dp), lambda b: (b, 0, 0)),   # Q
                pl.BlockSpec((Bt, Lu, Dp), lambda b: (b, 0, 0)),   # K
                pl.BlockSpec((Bt, Lu, Dp), lambda b: (b, 0, 0)),   # V
                pl.BlockSpec((Bt, 1, Lu), lambda b: (b, 0, 0)),    # V_mask (B,1,Lu)
                pl.BlockSpec((Dp, Dp), lambda b: (0, 0)),          # W1 (in, out)
                pl.BlockSpec((1, Dp), lambda b: (0, 0)),           # b1
                pl.BlockSpec((Dp, Dp), lambda b: (0, 0)),          # W2 (in, out)
                pl.BlockSpec((1, Dp), lambda b: (0, 0)),           # b2
            ],
            out_specs=pl.BlockSpec((Bt, Lr, Dp), lambda b: (b, 0, 0)),
        ),
        compiler_params=pltpu.CompilerParams(
            dimension_semantics=("parallel",),
            vmem_limit_bytes=vmem_limit),
    )(Q_, K_, V_, mask3, W1_, b1_, W2_, b2_)

    return out_padded[..., :D].astype(Q.dtype)


def reference_f32(Q, K, V, V_mask, W1, b1, W2, b2, epsilon=1e-8):
    """Pure-JAX f32 reference mirroring the PyTorch forward (is_layer_norm=False)."""
    D = Q.shape[-1]
    dk = jnp.float32(max(1.0, float(D)))
    QK = jnp.einsum("bqd,bkd->bqk", Q, K) / (jnp.sqrt(dk) + epsilon)
    mask = V_mask[:, None, :]
    p = jax.nn.softmax(QK * mask, axis=-1)
    p = p * mask
    p = p / (jnp.sum(p, axis=-1, keepdims=True) + 1e-13)
    V_att = jnp.einsum("bqk,bkd->bqd", p, V)
    X = Q + V_att
    h = jnp.maximum(X @ W1 + b1, 0.0)
    return h @ W2 + b2 + X


def reference_mixed(Q, K, V, V_mask, W1, b1, W2, b2, epsilon=1e-8,
                    mm_dtype=jnp.bfloat16):
    """Same math with the kernel's precision policy: bf16 matmul inputs,
    f32 accumulation, f32 softmax/renorm."""
    D = Q.shape[-1]
    scale = 1.0 / (math.sqrt(max(1.0, float(D))) + float(epsilon))
    s = jnp.einsum("bqd,bkd->bqk", Q.astype(mm_dtype), K.astype(mm_dtype),
                   preferred_element_type=jnp.float32) * scale
    mask = V_mask[:, None, :]
    p = jax.nn.softmax(s * mask, axis=-1)
    p = p * mask
    p = p / (jnp.sum(p, axis=-1, keepdims=True) + 1e-13)
    V_att = jnp.einsum("bqk,bkd->bqd", p.astype(mm_dtype), V.astype(mm_dtype),
                       preferred_element_type=jnp.float32)
    X = Q + V_att
    h = jnp.maximum(
        jnp.einsum("bqd,de->bqe", X.astype(mm_dtype), W1.astype(mm_dtype),
                   preferred_element_type=jnp.float32) + b1, 0.0)
    return jnp.einsum("bqd,de->bqe", h.astype(mm_dtype), W2.astype(mm_dtype),
                      preferred_element_type=jnp.float32) + b2 + X


if __name__ == "__main__":
    B, Lr, Lu, D = 2, 8, 8, 32

    key = jax.random.PRNGKey(0)
    kq, kk, kv, kw1, kw2, kb1, kb2 = jax.random.split(key, 7)

    Q = jax.random.normal(kq, (B, Lr, D), dtype=jnp.float32)
    K = jax.random.normal(kk, (B, Lu, D), dtype=jnp.float32)
    V = jax.random.normal(kv, (B, Lu, D), dtype=jnp.float32)

    # Mask: first batch fully valid, second batch has the last 3 positions masked out.
    lengths = jnp.array([Lu, Lu - 3], dtype=jnp.int32)
    V_mask = (jnp.arange(Lu)[None, :] < lengths[:, None]).astype(jnp.float32)

    # Deterministic parameter init (xavier-normal-like weights), stored as (in, out).
    xavier_std = (2.0 / (D + D)) ** 0.5
    W1 = xavier_std * jax.random.normal(kw1, (D, D), dtype=jnp.float32)
    W2 = xavier_std * jax.random.normal(kw2, (D, D), dtype=jnp.float32)
    bound = 1.0 / (D ** 0.5)
    b1 = jax.random.uniform(kb1, (1, D), minval=-bound, maxval=bound, dtype=jnp.float32)
    b2 = jax.random.uniform(kb2, (1, D), minval=-bound, maxval=bound, dtype=jnp.float32)

    out = transformer_block(Q, K, V, V_mask, W1, b1, W2, b2)
    out = jax.block_until_ready(out)
    assert out.shape == (B, Lr, D)

    ref_mixed = reference_mixed(Q, K, V, V_mask, W1, b1, W2, b2)
    ref_f32 = reference_f32(Q, K, V, V_mask, W1, b1, W2, b2)

    # Tight check vs a reference using the same mixed-precision policy.
    assert jnp.allclose(out, ref_mixed, atol=2e-2, rtol=2e-2), \
        "mismatch vs mixed-precision reference"
    # Looser check vs the full-f32 reference (deviation = bf16 MXU inputs only).
    assert jnp.allclose(out, ref_f32, atol=1.5e-1, rtol=1.5e-1), \
        "mismatch vs f32 reference"

    print("KERNEL_OK")
</pallas_src>

<mosaic_0001>
module attributes {stable_mosaic.version = 11 : i64} {
  func.func @_transformer_block_kernel(%arg0: i32, %arg1: memref<2x8x128xf32, #tpu.memory_space<vmem>>, %arg2: memref<2x8x128xf32, #tpu.memory_space<vmem>>, %arg3: memref<2x8x128xf32, #tpu.memory_space<vmem>>, %arg4: memref<2x1x8xf32, #tpu.memory_space<vmem>>, %arg5: memref<128x128xbf16, #tpu.memory_space<vmem>>, %arg6: memref<1x128xf32, #tpu.memory_space<vmem>>, %arg7: memref<128x128xbf16, #tpu.memory_space<vmem>>, %arg8: memref<1x128xf32, #tpu.memory_space<vmem>>, %arg9: memref<2x8x128xf32, #tpu.memory_space<vmem>>) attributes {dimension_semantics = [#tpu.dimension_semantics<parallel>], iteration_bounds = array<i64: 1>, scalar_prefetch = 0 : i64, scratch_operands = 0 : i64, tpu.core_type = #tpu.core_type<tc>, window_params = [{transform_indices = @transform_0, window_bounds = array<i64: 2, 8, 128>}, {transform_indices = @transform_1, window_bounds = array<i64: 2, 8, 128>}, {transform_indices = @transform_2, window_bounds = array<i64: 2, 8, 128>}, {transform_indices = @transform_3, window_bounds = array<i64: 2, 1, 8>}, {pipeline_mode = #tpu.pipeline_mode<synchronous>, transform_indices = @transform_4, window_bounds = array<i64: 128, 128>}, {pipeline_mode = #tpu.pipeline_mode<synchronous>, transform_indices = @transform_5, window_bounds = array<i64: 1, 128>}, {pipeline_mode = #tpu.pipeline_mode<synchronous>, transform_indices = @transform_6, window_bounds = array<i64: 128, 128>}, {pipeline_mode = #tpu.pipeline_mode<synchronous>, transform_indices = @transform_7, window_bounds = array<i64: 1, 128>}, {transform_indices = @transform_8, window_bounds = array<i64: 2, 8, 128>}]} {
    %c0 = arith.constant 0 : index
    %c0_0 = arith.constant 0 : index
    %c0_1 = arith.constant 0 : index
    %0 = vector.load %arg1[%c0, %c0_0, %c0_1] : memref<2x8x128xf32, #tpu.memory_space<vmem>>, vector<2x8x128xf32>
    %c0_2 = arith.constant 0 : index
    %c0_3 = arith.constant 0 : index
    %c0_4 = arith.constant 0 : index
    %1 = vector.load %arg2[%c0_2, %c0_3, %c0_4] : memref<2x8x128xf32, #tpu.memory_space<vmem>>, vector<2x8x128xf32>
    %c0_5 = arith.constant 0 : index
    %c0_6 = arith.constant 0 : index
    %c0_7 = arith.constant 0 : index
    %2 = vector.load %arg3[%c0_5, %c0_6, %c0_7] : memref<2x8x128xf32, #tpu.memory_space<vmem>>, vector<2x8x128xf32>
    %c0_8 = arith.constant 0 : index
    %c0_9 = arith.constant 0 : index
    %c0_10 = arith.constant 0 : index
    %3 = vector.load %arg4[%c0_8, %c0_9, %c0_10] : memref<2x1x8xf32, #tpu.memory_space<vmem>>, vector<2x1x8xf32>
    %4 = arith.truncf %0 : vector<2x8x128xf32> to vector<2x8x128xbf16>
    %5 = arith.truncf %1 : vector<2x8x128xf32> to vector<2x8x128xbf16>
    %cst = arith.constant dense<0.000000e+00> : vector<2x8x8xf32>
    %6 = tpu.matmul %4, %5, %cst {dimension_numbers = #tpu.dot_dimension_numbers<[2], [2], [1], [1], [0, 0, 0, 1, 1, 1], [0], [0]>} : vector<2x8x128xbf16>, vector<2x8x128xbf16>, vector<2x8x8xf32> -> vector<2x8x8xf32>
    %cst_11 = arith.constant 0.176776692 : f32
    %7 = vector.broadcast %cst_11 : f32 to vector<2x8x8xf32>
    %8 = arith.mulf %6, %7 : vector<2x8x8xf32>
    %9 = vector.broadcast %3 : vector<2x1x8xf32> to vector<2x8x8xf32>
    %10 = arith.mulf %8, %9 : vector<2x8x8xf32>
    %cst_12 = arith.constant dense<0xFF800000> : vector<2x8xf32>
    %11 = vector.multi_reduction <maximumf>, %10, %cst_12 [2] : vector<2x8x8xf32> to vector<2x8xf32>
    %12 = vector.shape_cast %11 : vector<2x8xf32> to vector<2x8x1xf32>
    %13 = vector.broadcast %12 : vector<2x8x1xf32> to vector<2x8x8xf32>
    %14 = arith.subf %10, %13 : vector<2x8x8xf32>
    %15 = math.exp %14 : vector<2x8x8xf32>
    %cst_13 = arith.constant dense<0.000000e+00> : vector<2x8xf32>
    %16 = vector.multi_reduction <add>, %15, %cst_13 [2] : vector<2x8x8xf32> to vector<2x8xf32>
    %17 = vector.shape_cast %16 : vector<2x8xf32> to vector<2x8x1xf32>
    %18 = tpu.reciprocal %17 {approx = true} : vector<2x8x1xf32> -> vector<2x8x1xf32>
    %19 = vector.broadcast %18 : vector<2x8x1xf32> to vector<2x8x8xf32>
    %20 = arith.mulf %15, %19 : vector<2x8x8xf32>
    %21 = vector.broadcast %3 : vector<2x1x8xf32> to vector<2x8x8xf32>
    %22 = arith.mulf %20, %21 : vector<2x8x8xf32>
    %cst_14 = arith.constant dense<0.000000e+00> : vector<2x8xf32>
    %23 = vector.multi_reduction <add>, %22, %cst_14 [2] : vector<2x8x8xf32> to vector<2x8xf32>
    %24 = vector.shape_cast %23 : vector<2x8xf32> to vector<2x8x1xf32>
    %cst_15 = arith.constant 9.99999982E-14 : f32
    %25 = vector.broadcast %cst_15 : f32 to vector<2x8x1xf32>
    %26 = arith.addf %24, %25 : vector<2x8x1xf32>
    %27 = tpu.reciprocal %26 {approx = true} : vector<2x8x1xf32> -> vector<2x8x1xf32>
    %28 = vector.broadcast %27 : vector<2x8x1xf32> to vector<2x8x8xf32>
    %29 = arith.mulf %22, %28 : vector<2x8x8xf32>
    %30 = arith.truncf %29 : vector<2x8x8xf32> to vector<2x8x8xbf16>
    %31 = arith.truncf %2 : vector<2x8x128xf32> to vector<2x8x128xbf16>
    %cst_16 = arith.constant dense<0.000000e+00> : vector<2x8x128xf32>
    %32 = tpu.matmul %30, %31, %cst_16 {dimension_numbers = #tpu.dot_dimension_numbers<[2], [1], [1], [2], [0, 0, 0, 1, 1, 2], [0], [0]>} : vector<2x8x8xbf16>, vector<2x8x128xbf16>, vector<2x8x128xf32> -> vector<2x8x128xf32>
    %33 = arith.addf %0, %32 : vector<2x8x128xf32>
    %34 = vector.shape_cast %33 : vector<2x8x128xf32> to vector<16x128xf32>
    %35 = arith.truncf %34 : vector<16x128xf32> to vector<16x128xbf16>
    %c0_17 = arith.constant 0 : index
    %c0_18 = arith.constant 0 : index
    %36 = vector.load %arg5[%c0_17, %c0_18] : memref<128x128xbf16, #tpu.memory_space<vmem>>, vector<128x128xbf16>
    %cst_19 = arith.constant dense<0.000000e+00> : vector<16x128xf32>
    %37 = tpu.matmul %35, %36, %cst_19 {dimension_numbers = #tpu.dot_dimension_numbers<[1], [0], [0], [1], [0, 0, 1, 1], [], []>} : vector<16x128xbf16>, vector<128x128xbf16>, vector<16x128xf32> -> vector<16x128xf32>
    %c0_20 = arith.constant 0 : index
    %c0_21 = arith.constant 0 : index
    %38 = vector.load %arg6[%c0_20, %c0_21] : memref<1x128xf32, #tpu.memory_space<vmem>>, vector<1x128xf32>
    %39 = vector.broadcast %38 : vector<1x128xf32> to vector<16x128xf32>
    %40 = arith.addf %37, %39 : vector<16x128xf32>
    %cst_22 = arith.constant 0.000000e+00 : f32
    %41 = vector.broadcast %cst_22 : f32 to vector<16x128xf32>
    %42 = arith.maximumf %40, %41 : vector<16x128xf32>
    %43 = arith.truncf %42 : vector<16x128xf32> to vector<16x128xbf16>
    %c0_23 = arith.constant 0 : index
    %c0_24 = arith.constant 0 : index
    %44 = vector.load %arg7[%c0_23, %c0_24] : memref<128x128xbf16, #tpu.memory_space<vmem>>, vector<128x128xbf16>
    %cst_25 = arith.constant dense<0.000000e+00> : vector<16x128xf32>
    %45 = tpu.matmul %43, %44, %cst_25 {dimension_numbers = #tpu.dot_dimension_numbers<[1], [0], [0], [1], [0, 0, 1, 1], [], []>} : vector<16x128xbf16>, vector<128x128xbf16>, vector<16x128xf32> -> vector<16x128xf32>
    %c0_26 = arith.constant 0 : index
    %c0_27 = arith.constant 0 : index
    %46 = vector.load %arg8[%c0_26, %c0_27] : memref<1x128xf32, #tpu.memory_space<vmem>>, vector<1x128xf32>
    %47 = vector.broadcast %46 : vector<1x128xf32> to vector<16x128xf32>
    %48 = arith.addf %45, %47 : vector<16x128xf32>
    %49 = arith.addf %48, %34 : vector<16x128xf32>
    %50 = vector.shape_cast %49 : vector<16x128xf32> to vector<2x8x128xf32>
    %c0_28 = arith.constant 0 : index
    %c0_29 = arith.constant 0 : index
    %c0_30 = arith.constant 0 : index
    %51 = vector.load %arg9[%c0_28, %c0_29, %c0_30] : memref<2x8x128xf32, #tpu.memory_space<vmem>>, vector<2x8x128xf32>
    tpu.vector_store %arg9[%c0_28, %c0_29, %c0_30], %50 {strides = array<i32>} : memref<2x8x128xf32, #tpu.memory_space<vmem>>, vector<2x8x128xf32>,
    return
  }
  func.func @transform_0(%arg0: i32) -> (i32, i32, i32) {
    %c0_i32 = arith.constant 0 : i32
    %c0_i32_0 = arith.constant 0 : i32
    %c0_i32_1 = arith.constant 0 : i32
    return %arg0, %c0_i32, %c0_i32_0 : i32, i32, i32
  }
  func.func @transform_1(%arg0: i32) -> (i32, i32, i32) {
    %c0_i32 = arith.constant 0 : i32
    %c0_i32_0 = arith.constant 0 : i32
    %c0_i32_1 = arith.constant 0 : i32
    return %arg0, %c0_i32, %c0_i32_0 : i32, i32, i32
  }
  func.func @transform_2(%arg0: i32) -> (i32, i32, i32) {
    %c0_i32 = arith.constant 0 : i32
    %c0_i32_0 = arith.constant 0 : i32
    %c0_i32_1 = arith.constant 0 : i32
    return %arg0, %c0_i32, %c0_i32_0 : i32, i32, i32
  }
  func.func @transform_3(%arg0: i32) -> (i32, i32, i32) {
    %c0_i32 = arith.constant 0 : i32
    %c0_i32_0 = arith.constant 0 : i32
    %c0_i32_1 = arith.constant 0 : i32
    return %arg0, %c0_i32, %c0_i32_0 : i32, i32, i32
  }
  func.func @transform_4(%arg0: i32) -> (i32, i32) {
    %c0_i32 = arith.constant 0 : i32
    %c0_i32_0 = arith.constant 0 : i32
    %c0_i32_1 = arith.constant 0 : i32
    return %c0_i32, %c0_i32_0 : i32, i32
  }
  func.func @transform_5(%arg0: i32) -> (i32, i32) {
    %c0_i32 = arith.constant 0 : i32
    %c0_i32_0 = arith.constant 0 : i32
    %c0_i32_1 = arith.constant 0 : i32
    return %c0_i32, %c0_i32_0 : i32, i32
  }
  func.func @transform_6(%arg0: i32) -> (i32, i32) {
    %c0_i32 = arith.constant 0 : i32
    %c0_i32_0 = arith.constant 0 : i32
    %c0_i32_1 = arith.constant 0 : i32
    return %c0_i32, %c0_i32_0 : i32, i32
  }
  func.func @transform_7(%arg0: i32) -> (i32, i32) {
    %c0_i32 = arith.constant 0 : i32
    %c0_i32_0 = arith.constant 0 : i32
    %c0_i32_1 = arith.constant 0 : i32
    return %c0_i32, %c0_i32_0 : i32, i32
  }
  func.func @transform_8(%arg0: i32) -> (i32, i32, i32) {
    %c0_i32 = arith.constant 0 : i32
    %c0_i32_0 = arith.constant 0 : i32
    %c0_i32_1 = arith.constant 0 : i32
    return %arg0, %c0_i32, %c0_i32_0 : i32, i32, i32
  }
}

</mosaic_0001>

<bundles_post_ra>
// kernel: tpu_custom_call.1
= control target key start
LH: loop header
LB: loop body
LE: loop exit
PB: predicated region body
PF: predicated region fallthrough
CT: control target
= control target key end

     0   :  { %13 = vsyncpa [#allocation3], 0  ;;  %s1109_s0 = inlined_call_operand.hbm [shape: f32[2,8,128], index: 0, kind: input, shape index: {}]   ;;  %s1110_s1 = inlined_call_operand.hbm [shape: f32[2,8,128], index: 1, kind: input, shape index: {}]   ;;  %s1111_s2 = inlined_call_operand.hbm [shape: f32[2,8,128], index: 2, kind: input, shape index: {}]   ;;  %s1112_s3 = inlined_call_operand.vmem [shape: f32[2,1,8], index: 3, kind: input, shape index: {}]   ;;  %s1113_s4 = inlined_call_operand.hbm [shape: bf16[128,128], index: 4, kind: input, shape index: {}]   ;;  %s1114_s5 = inlined_call_operand.vmem [shape: f32[1,128], index: 5, kind: input, shape index: {}]   ;;  %s1115_s6 = inlined_call_operand.hbm [shape: bf16[128,128], index: 6, kind: input, shape index: {}]   ;;  %s1116_s7 = inlined_call_operand.vmem [shape: f32[1,128], index: 7, kind: input, shape index: {}]   ;;  %s1117_s8 = inlined_call_operand.hbm [shape: f32[2,8,128], index: 8, kind: output, shape index: {}]  }
   0x1   :  { %14 = vsyncpa [#allocation6], 0 }
   0x2   :  { %15 = vsyncpa [#allocation9], 0 }
   0x3   :  { %16 = vsyncpa [#allocation4], 0  ;;  %s886_s27 = smov [#allocation5]   ;;  %s887_s29 = smov [#allocation8]  }
   0x4   :  { %s34_s28 = sshll.u32 %s886_s27, 4  ;;  %s60_s30 = sshll.u32 %s887_s29, 4  ;;  %s35_s28 = int_to_ptr.vmem [resolvable:$true] %s34_s28  ;;  %s943_s30 = int_to_ptr.vmem [resolvable:$true] %s60_s30 }
   0x5   :  { %s746_s11 = scalar_lea.hbm %s1110_s1, 256 }
   0x6   :  { %p747_p0 = scmp.ne.s32.totalorder %s1110_s1, %s746_s11  ;;  %p750_p1 = scmp.lt.u32.totalorder %s746_s11, %s1110_s1 }
   0x8   :  { %p752_p2 = pnand %p750_p1, %p747_p0 }
   0xa   :  { %755 = shalt.err (!%p752_p2)
}
   0xb   :  { %s756_s16 = scalar_lea.vmem %s35_s28, 256  ;;  %p761_p4 = scmp.lt.s32.totalorder %s35_s28, %s35_s28 }
   0xc   :  { %p757_p3 = scmp.ne.s32.totalorder %s35_s28, %s756_s16  ;;  %p762_p5 = scmp.lt.s32.totalorder %s756_s16, %s756_s16 }
   0xe   :  { %p763_p6 = por %p762_p5, %p761_p4 }
  0x10   :  { %p764_p7 = pnand %p763_p6, %p757_p3 }
  0x12   :  { %767 = shalt.err (!%p764_p7)
}
  0x13   :  { %s888_s17 = smov 128   ;;  %s889_s18 = smov 8  }
  0x14   :  { %40 = dma.hbm_to_vmem [thread:$0]  %s1110_s1, 256, %s35_s28, [#allocation6], %s888_s17, %s888_s17, %s889_s18  }
  0x15   :  { %s768_s23 = scalar_lea.hbm %s1113_s4, 1024 }
  0x16   :  { %p769_p8 = scmp.ne.s32.totalorder %s1113_s4, %s768_s23  ;;  %p772_p9 = scmp.lt.u32.totalorder %s768_s23, %s1113_s4 }
  0x18   :  { %p774_p10 = pnand %p772_p9, %p769_p8 }
  0x1a   :  { %777 = shalt.err (!%p774_p10)
}
  0x1b   :  { %s778_s29 = scalar_lea.vmem %s943_s30, 1024  ;;  %p783_p12 = scmp.lt.s32.totalorder %s943_s30, %s943_s30 }
  0x1c   :  { %p779_p11 = scmp.ne.s32.totalorder %s943_s30, %s778_s29  ;;  %p784_p13 = scmp.lt.s32.totalorder %s778_s29, %s778_s29 }
  0x1e   :  { %p785_p0 = por %p784_p13, %p783_p12 }
  0x20   :  { %p786_p1 = pnand %p785_p0, %p779_p11 }
  0x22   :  { %789 = shalt.err (!%p786_p1)
}
  0x23   :  { %s890_s1 = smov 64   ;;  %s891_s28 = smov 4  }
  0x24   :  { %66 = dma.hbm_to_vmem [thread:$0]  %s1113_s4, 1024, %s943_s30, [#allocation9], %s890_s1, %s890_s1, %s891_s28  }
  0x25   :  { %s892_s11 = smov [#allocation2]   ;;  %s893_s13 = smov [#allocation7]  }
  0x26   :  { %s22_s12 = sshll.u32 %s892_s11, 4  ;;  %s46_s14 = sshll.u32 %s893_s13, 4  ;;  %s23_s12 = int_to_ptr.vmem [resolvable:$true] %s22_s12  ;;  %s980_s14 = int_to_ptr.vmem [resolvable:$true] %s46_s14 }
  0x27   :  { %s790_s19 = scalar_lea.hbm %s1109_s0, 256 }
  0x28   :  { %p791_p2 = scmp.ne.s32.totalorder %s1109_s0, %s790_s19  ;;  %p794_p3 = scmp.lt.u32.totalorder %s790_s19, %s1109_s0 }
  0x2a   :  { %p796_p4 = pnand %p794_p3, %p791_p2 }
  0x2c   :  { %799 = shalt.err (!%p796_p4)
}
  0x2d   :  { %s800_s4 = scalar_lea.vmem %s23_s12, 256  ;;  %p805_p6 = scmp.lt.s32.totalorder %s23_s12, %s23_s12 }
  0x2e   :  { %p801_p5 = scmp.ne.s32.totalorder %s23_s12, %s800_s4  ;;  %p806_p7 = scmp.lt.s32.totalorder %s800_s4, %s800_s4 }
  0x30   :  { %p807_p8 = por %p806_p7, %p805_p6 }
  0x32   :  { %p808_p9 = pnand %p807_p8, %p801_p5 }
  0x34   :  { %811 = shalt.err (!%p808_p9)
}
  0x35   :  { %28 = dma.hbm_to_vmem [thread:$0]  %s1109_s0, 256, %s23_s12, [#allocation3], %s888_s17, %s888_s17, %s889_s18  }
  0x36   :  { %s812_s27 = scalar_lea.hbm %s1111_s2, 256 }
  0x37   :  { %p813_p10 = scmp.ne.s32.totalorder %s1111_s2, %s812_s27  ;;  %p816_p11 = scmp.lt.u32.totalorder %s812_s27, %s1111_s2 }
  0x39   :  { %p818_p12 = pnand %p816_p11, %p813_p10 }
  0x3b   :  { %821 = shalt.err (!%p818_p12)
}
  0x3c   :  { %s822_s13 = scalar_lea.vmem %s980_s14, 256  ;;  %p827_p0 = scmp.lt.s32.totalorder %s980_s14, %s980_s14 }
  0x3d   :  { %p823_p13 = scmp.ne.s32.totalorder %s980_s14, %s822_s13  ;;  %p828_p1 = scmp.lt.s32.totalorder %s822_s13, %s822_s13 }
  0x3f   :  { %p829_p2 = por %p828_p1, %p827_p0 }
  0x41   :  { %p830_p3 = pnand %p829_p2, %p823_p13 }
  0x43   :  { %833 = shalt.err (!%p830_p3)
}
  0x44   :  { %52 = dma.hbm_to_vmem [thread:$0]  %s1111_s2, 256, %s980_s14, [#allocation6], %s888_s17, %s888_s17, %s889_s18  }
  0x45   :  { %s894_s15 = smov [#allocation10]   ;;  %s834_s21 = scalar_lea.hbm %s1115_s6, 1024 }
  0x46   :  { %s74_s16 = sshll.u32 %s894_s15, 4  ;;  %p835_p4 = scmp.ne.s32.totalorder %s1115_s6, %s834_s21  ;;  %s75_s16 = int_to_ptr.vmem [resolvable:$true] %s74_s16 }
  0x47   :  { %p838_p5 = scmp.lt.u32.totalorder %s834_s21, %s1115_s6 }
  0x49   :  { %p840_p6 = pnand %p838_p5, %p835_p4 }
  0x4b   :  { %843 = shalt.err (!%p840_p6)
}
  0x4c   :  { %s844_s24 = scalar_lea.vmem %s75_s16, 1024  ;;  %p849_p8 = scmp.lt.s32.totalorder %s75_s16, %s75_s16 }
  0x4d   :  { %p845_p7 = scmp.ne.s32.totalorder %s75_s16, %s844_s24  ;;  %p850_p9 = scmp.lt.s32.totalorder %s844_s24, %s844_s24 }
  0x4f   :  { %p851_p10 = por %p850_p9, %p849_p8 }
  0x51   :  { %p852_p11 = pnand %p851_p10, %p845_p7 }
  0x53   :  { %855 = shalt.err (!%p852_p11)
}
  0x54   :  { %80 = dma.hbm_to_vmem [thread:$0]  %s1115_s6, 1024, %s75_s16, [#allocation9], %s890_s1, %s890_s1, %s891_s28  }
  0x55   :  { %878 = dma.done.wait [#allocation3], 256  }
  0x56   :  { %879 = vsyncadd [#allocation3], 4294967040 }
  0x57   :  { %880 = dma.done.wait [#allocation6], 512  }
  0x58   :  { %881 = vsyncadd [#allocation6], 4294966784 }
  0x59   :  { %882 = dma.done.wait [#allocation9], 2048  }
  0x5a   :  { %883 = vsyncadd [#allocation9], 4294965248  ;;  %v895_v0 = vmov 0.0   ;;  %vm896_vm0 = vmmov 0   ;;  %v101_v1 = vld [vmem:[#allocation5] sm:$0xff]  ;;  %v102_v2 = vld [vmem:[#allocation5 + $0x8] sm:$0xff] }
  0x5b   :  { %642 = vmatprep.subr.bf16.mxu0 %v895_v0  ;;  %648 = vmatprep.subr.bf16.mxu1 %v895_v0  ;;  %v109_v3 = vpack.c.bf16 %v101_v1, %v101_v1  ;;  %v110_v4 = vpack.c.bf16 %v102_v2, %v102_v2  ;;  %v1038_v5 = vld [vmem:[#allocation2] sm:$0xff]  ;;  %v1040_v6 = vld [vmem:[#allocation2 + $0x8] sm:$0xff]  ;;  %vm207_vm1 = vcmask 64512   ;;  %vm251_vm2 = vcmask 1043456   ;;  %v718_v57 = vld [vmem:[#allocation8] sm:$0xff]   ;;  %s897_s9 = smov [#allocation11]  }
  0x5c   :  { %644 = vmatprep.mubr.msk.bf16.mxu0 %vm896_vm0, %v895_v0  ;;  %650 = vmatprep.mubr.msk.bf16.mxu1 %vm896_vm0, %v895_v0  ;;  %v107_v7 = vpack.c.bf16 %v1038_v5, %v1038_v5  ;;  %v108_v8 = vpack.c.bf16 %v1040_v6, %v1040_v6  ;;  %v594_v11 = vld [vmem:[%s1112_s3] ss:$0 sm:$0xff]  ;;  %v595_v12 = vld [vmem:[%s1112_s3 + $0x1] ss:$0 sm:$0xff]  ;;  %v104_v48 = vld [vmem:[#allocation7 + $0x8] sm:$0xff] }
  0x5d   :  { %643 = vmatpush3.bf16.xpose.msra.mxu0 %v109_v3  ;;  %649 = vmatpush3.bf16.xpose.msra.mxu1 %v110_v4  ;;  %v103_v45 = vld [vmem:[#allocation7] sm:$0xff]  ;;  %v247_v49 = vpack.c.bf16 %v104_v48, %v104_v48  ;;  %v719_v61 = vld [vmem:[#allocation8 + $0x8] sm:$0xff]   ;;  %v721_v1 = vld [vmem:[#allocation8 + $0x18] sm:$0xff]  }
  0x5e   :  { %654 = vmatprep.subr.bf16.mxu0 %v895_v0  ;;  %660 = vmatprep.subr.bf16.mxu1 %v895_v0  ;;  %v246_v46 = vpack.c.bf16 %v103_v45, %v103_v45  ;;  %v720_v63 = vld [vmem:[#allocation8 + $0x10] sm:$0xff]   ;;  %v722_v2 = vld [vmem:[#allocation8 + $0x20] sm:$0xff]   ;;  %v723_v3 = vld [vmem:[#allocation8 + $0x28] sm:$0xff]  }
  0x5f   :  { %v299_v50 = vsel %vm251_vm2, %v247_v49, 0  ;;  %v724_v4 = vld [vmem:[#allocation8 + $0x30] sm:$0xff]  }
  0x60   :  { %v253_v47 = vsel %vm251_vm2, %v246_v46, 0 }
  0x64   :  { %645 = vmatmul.mubr.bf16.vlgmr.msra.gmra.mrb[0].mxu0 %v107_v7  ;;  %651 = vmatmul.mubr.bf16.vlgmr.msra.gmra.mrb[0].mxu1 %v108_v8  ;;  %v725_v7 = vld [vmem:[#allocation8 + $0x38] sm:$0xff]   ;;  %v726_v8 = vld [vmem:[#allocation10] sm:$0xff]  }
  0x65   :  { %656 = vmatprep.mubr.msk.bf16.mxu0 %vm896_vm0, %v895_v0  ;;  %662 = vmatprep.mubr.msk.bf16.mxu1 %vm896_vm0, %v895_v0 }
  0x66   :  { %655 = vmatpush3.bf16.msra.mxu0 %v253_v47  ;;  %661 = vmatpush3.bf16.msra.mxu1 %v299_v50 }
  0x67   :  { %666 = vmatprep.subr.bf16.mxu0 %v895_v0  ;;  %686 = vmatprep.subr.bf16.mxu1 %v895_v0 }
 0x137   :  { %v145_v9 = vpop.f32.mrb[0].mxu0  ;;  %v185_v10 = vpop.f32.mrb[0].mxu1 }
 0x138   :  { %v191_v13 = vmul.f32 0.17677669, %v145_v9  ;;  %v646_v14 = vpop.f32.mrb[1].mxu0  ;;  %v192_v15 = vmul.f32 0.17677669, %v185_v10  ;;  %v652_v16 = vpop.f32.mrb[1].mxu1 }
 0x139   :  { %v148_v17 = vpop.f32.mrb[2].mxu0  ;;  %v188_v18 = vpop.f32.mrb[2].mxu1  ;;  %v727_v9 = vld [vmem:[#allocation10 + $0x8] sm:$0xff]   ;;  %v728_v10 = vld [vmem:[#allocation10 + $0x10] sm:$0xff]  }
 0x13a   :  { %v647_v19 = vpop.f32.mrb[3].mxu0  ;;  %v653_v20 = vpop.f32.mrb[3].mxu1  ;;  %v205_v21 = vmul.f32 %v594_v11, %v191_v13  ;;  %v206_v22 = vmul.f32 %v595_v12, %v192_v15  ;;  %v731_v13 = vld [vmem:[#allocation10 + $0x28] sm:$0xff]  }
 0x13c   :  { %v208_v23 = vsel %vm207_vm1, %v205_v21, -inf  ;;  %v211_v24 = vsel %vm207_vm1, %v206_v22, -inf }
 0x13d   :  { %209 = vmax.xlane.f32.xlu0 %v208_v23 }
 0x141   :  { %212 = vmax.xlane.f32.xlu0 %v211_v24 }
 0x1ca   :  { %v210_v25 = vpop.xlane.xlu0 %209 }
 0x1cb   :  { %v214_v26 = vsub.f32 %v205_v21, %v210_v25  ;;  %v732_v25 = vld [vmem:[#allocation10 + $0x30] sm:$0xff]  }
 0x1cd   :  { %v216_v27 = vmul.f32 1.442695, %v214_v26  ;;  %v733_v26 = vld [vmem:[#allocation10 + $0x38] sm:$0xff]  }
 0x1ce   :  { %v213_v28 = vpop.xlane.xlu0 %212 }
 0x1cf   :  { %734 = vpow2.f32 %v216_v27  ;;  %v215_v29 = vsub.f32 %v206_v22, %v213_v28  ;;  %v598_v27 = vld [vmem:[%s1114_s5] ss:$0 sm:$0xff]  ;;  %s580_s5 = sshll.u32 %s897_s9, 4  ;;  %s581_s5 = int_to_ptr.vmem [resolvable:$true] %s580_s5 }
 0x1d0   :  { %s856_s10 = scalar_lea.vmem %s581_s5, 256  ;;  %p861_p13 = scmp.lt.s32.totalorder %s581_s5, %s581_s5 }
 0x1d1   :  { %v218_v30 = vmul.f32 1.442695, %v215_v29  ;;  %p857_p12 = scmp.ne.s32.totalorder %s581_s5, %s856_s10  ;;  %p862_p0 = scmp.lt.s32.totalorder %s856_s10, %s856_s10 }
 0x1d3   :  { %736 = vpow2.f32 %v218_v30  ;;  %p863_p1 = por %p862_p0, %p861_p13 }
 0x1d5   :  { %p864_p2 = pnand %p863_p1, %p857_p12 }
 0x1d9   :  { %v735_v31 = vpop.eup %734 }
 0x1da   :  { %v220_v32 = vsel %vm207_vm1, %v735_v31, 0.0 }
 0x1db   :  { %221 = vadd.xlane.f32.xlu1 %v220_v32 }
 0x1dd   :  { %v737_v33 = vpop.eup %736 }
 0x1de   :  { %v223_v34 = vsel %vm207_vm1, %v737_v33, 0.0 }
 0x1df   :  { %224 = vadd.xlane.f32.xlu1 %v223_v34 }
 0x268   :  { %v222_v35 = vpop.xlane.xlu1 %221 }
 0x269   :  { %738 = vrcp.f32 %v222_v35 }
 0x26c   :  { %v225_v36 = vpop.xlane.xlu1 %224 }
 0x26d   :  { %740 = vrcp.f32 %v225_v36 }
 0x273   :  { %v739_v37 = vpop.eup %738 }
 0x274   :  { %v228_v38 = vmul.f32 %v739_v37, %v735_v31 }
 0x276   :  { %v230_v39 = vmul.f32 %v594_v11, %v228_v38  ;;  %v729_v11 = vld [vmem:[#allocation10 + $0x18] sm:$0xff]  }
 0x277   :  { %v741_v40 = vpop.eup %740 }
 0x278   :  { %v232_v41 = vsel %vm207_vm1, %v230_v39, 0.0  ;;  %v229_v42 = vmul.f32 %v741_v40, %v737_v33 }
 0x279   :  { %233 = vadd.xlane.f32.xlu0 %v232_v41 }
 0x27a   :  { %v231_v43 = vmul.f32 %v595_v12, %v229_v42  ;;  %v730_v12 = vld [vmem:[#allocation10 + $0x20] sm:$0xff]  }
 0x27c   :  { %v235_v44 = vsel %vm207_vm1, %v231_v43, 0.0 }
 0x27d   :  { %236 = vadd.xlane.f32.xlu1 %v235_v44 }
 0x306   :  { %v234_v51 = vpop.xlane.xlu0 %233 }
 0x307   :  { %v238_v52 = vadd.f32 1e-13, %v234_v51 }
 0x309   :  { %742 = vrcp.f32 %v238_v52 }
 0x30a   :  { %v237_v53 = vpop.xlane.xlu1 %236 }
 0x30b   :  { %v239_v54 = vadd.f32 1e-13, %v237_v53 }
 0x30d   :  { %744 = vrcp.f32 %v239_v54 }
 0x313   :  { %v743_v55 = vpop.eup %742 }
 0x314   :  { %v242_v56 = vmul.f32 %v743_v55, %v230_v39 }
 0x316   :  { %v244_v58 = vpack.c.bf16 %v242_v56, %v242_v56 }
 0x317   :  { %v745_v59 = vpop.eup %744 }
 0x318   :  { %v243_v60 = vmul.f32 %v745_v59, %v231_v43  ;;  %657 = vmatmul.mubr.msk.bf16.vlgmr.msra.gmra.mrb[4].mxu0 %vm207_vm1, %v244_v58 }
 0x319   :  { %667 = vmatpush3.bf16.msra.mxu0 %v718_v57  ;;  %682 = vmatprep.mubr.msk.bf16.mxu0 %vm896_vm0, %v895_v0 }
 0x31a   :  { %v245_v62 = vpack.c.bf16 %v243_v60, %v243_v60  ;;  %668 = vmatprep.subr.bf16.mxu0 %v895_v0 }
 0x31c   :  { %663 = vmatmul.mubr.msk.bf16.vlgmr.msra.gmra.mrb[4].mxu1 %vm207_vm1, %v245_v62 }
 0x31d   :  { %669 = vmatpush3.bf16.msra.mxu0 %v719_v61  ;;  %702 = vmatprep.mubr.msk.bf16.mxu1 %vm896_vm0, %v895_v0 }
 0x31e   :  { %670 = vmatprep.subr.bf16.mxu0 %v895_v0  ;;  %687 = vmatpush3.bf16.msra.mxu1 %v726_v8 }
 0x31f   :  { %688 = vmatprep.subr.bf16.mxu1 %v895_v0 }
 0x321   :  { %671 = vmatpush3.bf16.msra.mxu0 %v720_v63 }
 0x322   :  { %672 = vmatprep.subr.bf16.mxu0 %v895_v0  ;;  %689 = vmatpush3.bf16.msra.mxu1 %v727_v9 }
 0x323   :  { %690 = vmatprep.subr.bf16.mxu1 %v895_v0 }
 0x325   :  { %673 = vmatpush3.bf16.msra.mxu0 %v721_v1 }
 0x326   :  { %674 = vmatprep.subr.bf16.mxu0 %v895_v0  ;;  %691 = vmatpush3.bf16.msra.mxu1 %v728_v10 }
 0x327   :  { %692 = vmatprep.subr.bf16.mxu1 %v895_v0 }
 0x329   :  { %675 = vmatpush3.bf16.msra.mxu0 %v722_v2 }
 0x32a   :  { %676 = vmatprep.subr.bf16.mxu0 %v895_v0  ;;  %693 = vmatpush3.bf16.msra.mxu1 %v729_v11 }
 0x32b   :  { %694 = vmatprep.subr.bf16.mxu1 %v895_v0 }
 0x32d   :  { %677 = vmatpush3.bf16.msra.mxu0 %v723_v3 }
 0x32e   :  { %678 = vmatprep.subr.bf16.mxu0 %v895_v0  ;;  %695 = vmatpush3.bf16.msra.mxu1 %v730_v12 }
 0x32f   :  { %696 = vmatprep.subr.bf16.mxu1 %v895_v0 }
 0x331   :  { %679 = vmatpush3.bf16.msra.mxu0 %v724_v4 }
 0x332   :  { %680 = vmatprep.subr.bf16.mxu0 %v895_v0  ;;  %697 = vmatpush3.bf16.msra.mxu1 %v731_v13 }
 0x333   :  { %698 = vmatprep.subr.bf16.mxu1 %v895_v0 }
 0x335   :  { %681 = vmatpush3.bf16.msra.mxu0 %v725_v7 }
 0x336   :  { %699 = vmatpush3.bf16.msra.mxu1 %v732_v25 }
 0x337   :  { %700 = vmatprep.subr.bf16.mxu1 %v895_v0  ;;  %v607_v0 = vld [vmem:[%s1116_s7] ss:$0 sm:$0xff] }
 0x33a   :  { %701 = vmatpush3.bf16.msra.mxu1 %v733_v26 }
 0x3eb   :  { %v289_v14 = vpop.f32.mrb[4].mxu0 }
 0x3ec   :  { %v658_v15 = vpop.f32.mrb[5].mxu0  ;;  %v341_v19 = vadd.f32 %v289_v14, %v1038_v5 }
 0x3ed   :  { %v292_v16 = vpop.f32.mrb[6].mxu0 }
 0x3ee   :  { %v659_v17 = vpop.f32.mrb[7].mxu0 }
 0x3ef   :  { %v335_v18 = vpop.f32.mrb[4].mxu1 }
 0x3f0   :  { %v342_v20 = vadd.f32 %v335_v18, %v1040_v6  ;;  %v664_v21 = vpop.f32.mrb[5].mxu1 }
 0x3f1   :  { %v338_v22 = vpop.f32.mrb[6].mxu1 }
 0x3f2   :  { %v343_v23 = vpack.c.bf16 %v342_v20, %v341_v19  ;;  %v665_v24 = vpop.f32.mrb[7].mxu1 }
 0x3f4   :  { %683 = vmatmul.mubr.bf16.vlgmr.msra.gmra.mrb[8].mxu0 %v343_v23 }
 0x4c7   :  { %v449_v28 = vpop.f32.mrb[8].mxu0 }
 0x4c8   :  { %v450_v29 = vadd.f32 %v598_v27, %v449_v28  ;;  %v684_v5 = vpop.f32.mrb[9].mxu0 }
 0x4c9   :  { %v452_v30 = vpop.f32.mrb[10].mxu0 }
 0x4ca   :  { %v453_v6 = vadd.f32 %v598_v27, %v452_v30  ;;  %v685_v31 = vpop.f32.mrb[11].mxu0  ;;  %v456_v32 = vmax.f32 %v450_v29, 0.0 }
 0x4cc   :  { %v457_v33 = vmax.f32 %v453_v6, 0.0 }
 0x4ce   :  { %v458_v34 = vpack.c.bf16 %v457_v33, %v456_v32 }
 0x4d0   :  { %703 = vmatmul.mubr.bf16.vlgmr.msra.gmra.mrb[8].mxu1 %v458_v34 }
 0x5a3   :  { %v564_v35 = vpop.f32.mrb[8].mxu1 }
 0x5a4   :  { %v565_v36 = vadd.f32 %v607_v0, %v564_v35  ;;  %v704_v37 = vpop.f32.mrb[9].mxu1 }
 0x5a5   :  { %v567_v38 = vpop.f32.mrb[10].mxu1 }
 0x5a6   :  { %v571_v39 = vadd.f32 %v565_v36, %v341_v19  ;;  %v568_v40 = vadd.f32 %v607_v0, %v567_v38  ;;  %v705_v41 = vpop.f32.mrb[11].mxu1 }
 0x5a8   :  { %573 = vst [vmem:[#allocation11] sm:$0xff] %v571_v39  ;;  %v572_v42 = vadd.f32 %v568_v40, %v342_v20 }
 0x5aa   :  { %574 = vst [vmem:[#allocation11 + $0x8] sm:$0xff] %v572_v42 }
 0x5ab   :  { %867 = shalt.err (!%p864_p2)
}
 0x5ac   :  { %s868_s13 = scalar_lea.hbm %s1117_s8, 256 }
 0x5ad   :  { %p869_p3 = scmp.ne.s32.totalorder %s1117_s8, %s868_s13  ;;  %p872_p4 = scmp.lt.u32.totalorder %s868_s13, %s1117_s8 }
 0x5af   :  { %p874_p5 = pnand %p872_p4, %p869_p3 }
 0x5b1   :  { %877 = shalt.err (!%p874_p5)
}
 0x5b2   :  { %586 = dma.vmem_to_hbm [thread:$0]  %s581_s5, 256, %s1117_s8, [#allocation4], %s888_s17, %s888_s17, %s889_s18  }
 0x5b3   :  { %884 = dma.done.wait [#allocation4], 256  }
 0x5b4   :  { %885 = vsyncadd [#allocation4], 4294967040 }
 0x5b5   :  { %590 = vsyncpa [#allocation3], 1 }
 0x5b6   :  { %591 = vsyncpa [#allocation6], 1 }
 0x5b7   :  { %592 = vsyncpa [#allocation9], 1 }
 0x5b8   :  { %593 = vsyncpa [#allocation4], 1 }

</bundles_post_ra>
